<compile_context>
chip_gen: v7x
topology: tpu7x:2x2x1
jax: 0.10.0
libtpu: 0.0.40
codegen_flags: <defaults>
</compile_context>

<pallas_src>
import jax
import jax.numpy as jnp
from jax import lax
from jax.experimental import pallas as pl
from jax.experimental.pallas import tpu as pltpu


def lstm_kernel(seq_ref, x_ref, wih_ref, whh_ref, b_ref, h_out_ref, xw_ref):
    """Fused full-sequence LSTM recurrence (single kernel invocation).

    seq_ref : (Bp, 1)     int32 valid lengths (0 for padded batch rows)
    x_ref   : (T*Bp, E)   bf16 time-major embedded tokens, row t*Bp + b
    wih_ref : (E, 4H)     bf16 W_ih^T   (gate order i, f, g, o, as in PyTorch)
    whh_ref : (H, 4H)     bf16 W_hh^T
    b_ref   : (1, 4H)     f32  b_ih + b_hh
    h_out_ref: (Bp, H)    f32  final hidden state of the (single, last) layer
    xw_ref  : (T*Bp, 4H)  f32  VMEM scratch for the hoisted input projection
    """
    Bp = seq_ref.shape[0]
    H = whh_ref.shape[0]
    T = x_ref.shape[0] // Bp

    seq = seq_ref[...]                      # (Bp, 1) int32
    whh = whh_ref[...]                      # (H, 4H) bf16, hoisted (loop-invariant)

    # Hoist the input projection out of the serial chain: one big bf16 MXU call for
    # all T time steps (M = T*Bp rows), f32 accumulation, bias fused. Staged into a
    # VMEM scratch ref so only the current (Bp,4H) slice is live inside the loop.
    xw_ref[...] = (
        jnp.dot(x_ref[...], wih_ref[...], preferred_element_type=jnp.float32)
        + b_ref[...]
    )

    h0 = jnp.zeros((Bp, H), jnp.float32)
    c0 = jnp.zeros((Bp, H), jnp.float32)

    def step(t, carry):
        h, c = carry
        # Bp is a multiple of 8, so the per-step row window is sublane-aligned.
        row = pl.multiple_of(t * Bp, 8)
        xw_t = xw_ref[pl.ds(row, Bp), :]                      # (Bp, 4H) f32

        # Only this small bf16 dot sits on the recurrent dependency path.
        gates = xw_t + jnp.dot(
            h.astype(jnp.bfloat16), whh, preferred_element_type=jnp.float32
        )                                                     # (Bp, 4H) f32

        sig = jax.nn.sigmoid(gates)          # full-tile activation (f32, EUP)
        i_g = sig[:, 0:H]
        f_g = sig[:, H:2 * H]
        o_g = sig[:, 3 * H:4 * H]
        g_g = jnp.tanh(gates[:, 2 * H:3 * H])

        c_new = f_g * c + i_g * g_g
        h_new = o_g * jnp.tanh(c_new)

        # Packed-sequence semantics: state only advances while t < seq_len[b].
        valid = seq > t                      # (Bp, 1) bool, broadcasts over H lanes
        h = jnp.where(valid, h_new, h)
        c = jnp.where(valid, c_new, c)
        return h, c

    # T is small & static -> fully unrolled, but live ranges stay bounded because the
    # projection is re-loaded from the scratch ref each step.
    h, _ = lax.fori_loop(0, T, step, (h0, c0), unroll=True)

    h_out_ref[...] = h


def encoder_lstm_forward(x_ids, seq_len, emb, w_ih, w_hh, b_ih, b_hh):
    """Forward pass equivalent to EncoderLSTM.forward (single-layer LSTM).

    Embedding gather + layout transposes + batch padding are plain-JAX glue; the
    entire LSTM recurrence (input projection + per-step gates) runs inside one
    Pallas kernel with all operands VMEM-resident.
    """
    B, T = x_ids.shape
    E = emb.shape[1]
    H = w_hh.shape[1]
    Bp = ((B + 7) // 8) * 8                                       # pad batch to sublanes

    x_emb = jnp.take(emb, x_ids, axis=0).astype(jnp.float32)      # (B, T, E)
    x_emb = jnp.pad(x_emb, ((0, Bp - B), (0, 0), (0, 0)))         # (Bp, T, E)
    x_tm = jnp.transpose(x_emb, (1, 0, 2))                        # (T, Bp, E)
    x_flat = x_tm.reshape(T * Bp, E).astype(jnp.bfloat16)         # row t*Bp + b

    wih_t = w_ih.T.astype(jnp.bfloat16)                           # (E, 4H)
    whh_t = w_hh.T.astype(jnp.bfloat16)                           # (H, 4H)
    bias = (b_ih + b_hh)[None, :].astype(jnp.float32)             # (1, 4H)
    seq = jnp.pad(seq_len.astype(jnp.int32), (0, Bp - B))[:, None]  # (Bp, 1), pad rows = 0

    vmem_spec = pl.BlockSpec(memory_space=pltpu.MemorySpace.VMEM)

    h_out = pl.pallas_call(
        lstm_kernel,
        out_shape=jax.ShapeDtypeStruct((Bp, H), jnp.float32),
        in_specs=[vmem_spec] * 5,            # everything VMEM-resident, single invocation
        out_specs=vmem_spec,
        scratch_shapes=[pltpu.VMEM((T * Bp, 4 * H), jnp.float32)],
    )(seq, x_flat, wih_t, whh_t, bias)

    return h_out[:B]                                              # drop padded batch rows


def reference_forward(x_ids, seq_len, emb, w_ih, w_hh, b_ih, b_hh):
    """Pure-JAX f32 reference replicating pack_padded_sequence + nn.LSTM semantics."""
    B, T = x_ids.shape
    H = w_hh.shape[1]
    x_emb = jnp.take(emb, x_ids, axis=0)  # (B, T, E)

    def step(carry, t):
        h, c = carry
        x_t = x_emb[:, t, :]
        gates = x_t @ w_ih.T + h @ w_hh.T + b_ih + b_hh
        i = jax.nn.sigmoid(gates[:, 0:H])
        f = jax.nn.sigmoid(gates[:, H:2 * H])
        g = jnp.tanh(gates[:, 2 * H:3 * H])
        o = jax.nn.sigmoid(gates[:, 3 * H:4 * H])
        c_new = f * c + i * g
        h_new = o * jnp.tanh(c_new)
        m = (t < seq_len).astype(jnp.float32)[:, None]
        return (m * h_new + (1 - m) * h, m * c_new + (1 - m) * c), None

    (h, _), _ = jax.lax.scan(
        step,
        (jnp.zeros((B, H), jnp.float32), jnp.zeros((B, H), jnp.float32)),
        jnp.arange(T),
    )
    return h


if __name__ == "__main__":
    # Small shapes consistent with the module defaults (emb_dim=32, hidden_dim=32).
    B, T = 4, 8
    VOCAB = 16
    E = 32
    H = 32

    key = jax.random.PRNGKey(0)
    k_emb, k_ih, k_hh, k_bih, k_bhh, k_x = jax.random.split(key, 6)

    # Deterministic parameter init (nn.Embedding(vocab+1, E, padding_idx=vocab)).
    emb = jax.random.normal(k_emb, (VOCAB + 1, E), dtype=jnp.float32)
    emb = emb.at[VOCAB].set(0.0)  # padding_idx row is zero

    bound = 1.0 / jnp.sqrt(H)
    w_ih = jax.random.uniform(k_ih, (4 * H, E), minval=-bound, maxval=bound, dtype=jnp.float32)
    w_hh = jax.random.uniform(k_hh, (4 * H, H), minval=-bound, maxval=bound, dtype=jnp.float32)
    b_ih = jax.random.uniform(k_bih, (4 * H,), minval=-bound, maxval=bound, dtype=jnp.float32)
    b_hh = jax.random.uniform(k_bhh, (4 * H,), minval=-bound, maxval=bound, dtype=jnp.float32)

    # Example inputs: padded token-id batch + lengths (enforce_sorted=False -> any order).
    x_ids = jax.random.randint(k_x, (B, T), minval=0, maxval=VOCAB, dtype=jnp.int32)
    seq_len = jnp.array([8, 5, 3, 6], dtype=jnp.int32)
    # Mark padded positions with padding_idx (as a real pipeline would).
    pad_mask = jnp.arange(T)[None, :] >= seq_len[:, None]
    x_ids = jnp.where(pad_mask, VOCAB, x_ids)

    out = encoder_lstm_forward(x_ids, seq_len, emb, w_ih, w_hh, b_ih, b_hh)
    out = jax.block_until_ready(out)

    ref = reference_forward(x_ids, seq_len, emb, w_ih, w_hh, b_ih, b_hh)
    assert out.shape == (B, H)
    # bf16 MXU operands (f32 accumulation / elementwise) -> loosened tolerance vs f32 ref.
    assert jnp.allclose(out, ref, atol=2e-2, rtol=2e-2), "Pallas output mismatch vs reference"

    print("KERNEL_OK")
</pallas_src>

<mosaic_0001>
module attributes {stable_mosaic.version = 11 : i64} {
  func.func @lstm_kernel(%arg0: memref<8x1xi32, #tpu.memory_space<vmem>>, %arg1: memref<64x32xbf16, #tpu.memory_space<vmem>>, %arg2: memref<32x128xbf16, #tpu.memory_space<vmem>>, %arg3: memref<32x128xbf16, #tpu.memory_space<vmem>>, %arg4: memref<1x128xf32, #tpu.memory_space<vmem>>, %arg5: memref<8x32xf32, #tpu.memory_space<vmem>>, %arg6: memref<64x128xf32, #tpu.memory_space<vmem>>) attributes {dimension_semantics = [], scalar_prefetch = 0 : i64, scratch_operands = 1 : i64, tpu.core_type = #tpu.core_type<tc>} {
    %c0 = arith.constant 0 : index
    %c0_0 = arith.constant 0 : index
    %0 = vector.load %arg0[%c0, %c0_0] : memref<8x1xi32, #tpu.memory_space<vmem>>, vector<8x1xi32>
    %c0_1 = arith.constant 0 : index
    %c0_2 = arith.constant 0 : index
    %1 = vector.load %arg3[%c0_1, %c0_2] : memref<32x128xbf16, #tpu.memory_space<vmem>>, vector<32x128xbf16>
    %c0_3 = arith.constant 0 : index
    %c0_4 = arith.constant 0 : index
    %2 = vector.load %arg1[%c0_3, %c0_4] : memref<64x32xbf16, #tpu.memory_space<vmem>>, vector<64x32xbf16>
    %c0_5 = arith.constant 0 : index
    %c0_6 = arith.constant 0 : index
    %3 = vector.load %arg2[%c0_5, %c0_6] : memref<32x128xbf16, #tpu.memory_space<vmem>>, vector<32x128xbf16>
    %cst = arith.constant dense<0.000000e+00> : vector<64x128xf32>
    %4 = tpu.matmul %2, %3, %cst {dimension_numbers = #tpu.dot_dimension_numbers<[1], [0], [0], [1], [0, 0, 1, 1], [], []>} : vector<64x32xbf16>, vector<32x128xbf16>, vector<64x128xf32> -> vector<64x128xf32>
    %c0_7 = arith.constant 0 : index
    %c0_8 = arith.constant 0 : index
    %5 = vector.load %arg4[%c0_7, %c0_8] : memref<1x128xf32, #tpu.memory_space<vmem>>, vector<1x128xf32>
    %6 = vector.broadcast %5 : vector<1x128xf32> to vector<64x128xf32>
    %7 = arith.addf %4, %6 : vector<64x128xf32>
    %c0_9 = arith.constant 0 : index
    %c0_10 = arith.constant 0 : index
    %8 = vector.load %arg6[%c0_9, %c0_10] : memref<64x128xf32, #tpu.memory_space<vmem>>, vector<64x128xf32>
    tpu.vector_store %arg6[%c0_9, %c0_10], %7 {strides = array<i32>} : memref<64x128xf32, #tpu.memory_space<vmem>>, vector<64x128xf32>,
    %cst_11 = arith.constant 0.000000e+00 : f32
    %9 = vector.broadcast %cst_11 : f32 to vector<8x32xf32>
    %cst_12 = arith.constant 0.000000e+00 : f32
    %10 = vector.broadcast %cst_12 : f32 to vector<8x32xf32>
    %c0_i32 = arith.constant 0 : i32
    %c8_i32 = arith.constant 8 : i32
    %11 = arith.muli %c0_i32, %c8_i32 : i32
    %12 = tpu.assume_multiple %11, 8 : i32
    %13 = arith.index_cast %12 : i32 to index
    %c0_13 = arith.constant 0 : index
    %14 = vector.load %arg6[%13, %c0_13] : memref<64x128xf32, #tpu.memory_space<vmem>>, vector<8x128xf32>
    %15 = arith.truncf %9 : vector<8x32xf32> to vector<8x32xbf16>
    %cst_14 = arith.constant dense<0.000000e+00> : vector<8x128xf32>
    %16 = tpu.matmul %15, %1, %cst_14 {dimension_numbers = #tpu.dot_dimension_numbers<[1], [0], [0], [1], [0, 0, 1, 1], [], []>} : vector<8x32xbf16>, vector<32x128xbf16>, vector<8x128xf32> -> vector<8x128xf32>
    %17 = arith.addf %14, %16 : vector<8x128xf32>
    %18 = arith.negf %17 : vector<8x128xf32>
    %19 = math.exp %18 : vector<8x128xf32>
    %cst_15 = arith.constant 1.000000e+00 : f32
    %20 = vector.broadcast %cst_15 : f32 to vector<8x128xf32>
    %21 = arith.addf %20, %19 : vector<8x128xf32>
    %22 = arith.divf %20, %21 : vector<8x128xf32>
    %23 = vector.extract_strided_slice %22 {offsets = [0, 0], sizes = [8, 32], strides = [1, 1]} : vector<8x128xf32> to vector<8x32xf32>
    %24 = vector.extract_strided_slice %22 {offsets = [0, 32], sizes = [8, 32], strides = [1, 1]} : vector<8x128xf32> to vector<8x32xf32>
    %25 = vector.extract_strided_slice %22 {offsets = [0, 96], sizes = [8, 32], strides = [1, 1]} : vector<8x128xf32> to vector<8x32xf32>
    %26 = vector.extract_strided_slice %17 {offsets = [0, 64], sizes = [8, 32], strides = [1, 1]} : vector<8x128xf32> to vector<8x32xf32>
    %27 = math.tanh %26 : vector<8x32xf32>
    %28 = arith.mulf %24, %10 : vector<8x32xf32>
    %29 = arith.mulf %23, %27 : vector<8x32xf32>
    %30 = arith.addf %28, %29 : vector<8x32xf32>
    %31 = math.tanh %30 : vector<8x32xf32>
    %32 = arith.mulf %25, %31 : vector<8x32xf32>
    %33 = vector.broadcast %c0_i32 : i32 to vector<8x1xi32>
    %34 = arith.cmpi sgt, %0, %33 : vector<8x1xi32>
    %35 = vector.shape_cast %34 : vector<8x1xi1> to vector<8x1xi1>
    %36 = vector.broadcast %35 : vector<8x1xi1> to vector<8x32xi1>
    %37 = arith.select %36, %32, %9 : vector<8x32xi1>, vector<8x32xf32>
    %38 = vector.shape_cast %34 : vector<8x1xi1> to vector<8x1xi1>
    %39 = vector.broadcast %38 : vector<8x1xi1> to vector<8x32xi1>
    %40 = arith.select %39, %30, %10 : vector<8x32xi1>, vector<8x32xf32>
    %c1_i32 = arith.constant 1 : i32
    %c8_i32_16 = arith.constant 8 : i32
    %41 = arith.muli %c1_i32, %c8_i32_16 : i32
    %42 = tpu.assume_multiple %41, 8 : i32
    %43 = arith.index_cast %42 : i32 to index
    %c0_17 = arith.constant 0 : index
    %44 = vector.load %arg6[%43, %c0_17] : memref<64x128xf32, #tpu.memory_space<vmem>>, vector<8x128xf32>
    %45 = arith.truncf %37 : vector<8x32xf32> to vector<8x32xbf16>
    %cst_18 = arith.constant dense<0.000000e+00> : vector<8x128xf32>
    %46 = tpu.matmul %45, %1, %cst_18 {dimension_numbers = #tpu.dot_dimension_numbers<[1], [0], [0], [1], [0, 0, 1, 1], [], []>} : vector<8x32xbf16>, vector<32x128xbf16>, vector<8x128xf32> -> vector<8x128xf32>
    %47 = arith.addf %44, %46 : vector<8x128xf32>
    %48 = arith.negf %47 : vector<8x128xf32>
    %49 = math.exp %48 : vector<8x128xf32>
    %cst_19 = arith.constant 1.000000e+00 : f32
    %50 = vector.broadcast %cst_19 : f32 to vector<8x128xf32>
    %51 = arith.addf %50, %49 : vector<8x128xf32>
    %52 = arith.divf %50, %51 : vector<8x128xf32>
    %53 = vector.extract_strided_slice %52 {offsets = [0, 0], sizes = [8, 32], strides = [1, 1]} : vector<8x128xf32> to vector<8x32xf32>
    %54 = vector.extract_strided_slice %52 {offsets = [0, 32], sizes = [8, 32], strides = [1, 1]} : vector<8x128xf32> to vector<8x32xf32>
    %55 = vector.extract_strided_slice %52 {offsets = [0, 96], sizes = [8, 32], strides = [1, 1]} : vector<8x128xf32> to vector<8x32xf32>
    %56 = vector.extract_strided_slice %47 {offsets = [0, 64], sizes = [8, 32], strides = [1, 1]} : vector<8x128xf32> to vector<8x32xf32>
    %57 = math.tanh %56 : vector<8x32xf32>
    %58 = arith.mulf %54, %40 : vector<8x32xf32>
    %59 = arith.mulf %53, %57 : vector<8x32xf32>
    %60 = arith.addf %58, %59 : vector<8x32xf32>
    %61 = math.tanh %60 : vector<8x32xf32>
    %62 = arith.mulf %55, %61 : vector<8x32xf32>
    %63 = vector.broadcast %c1_i32 : i32 to vector<8x1xi32>
    %64 = arith.cmpi sgt, %0, %63 : vector<8x1xi32>
    %65 = vector.shape_cast %64 : vector<8x1xi1> to vector<8x1xi1>
    %66 = vector.broadcast %65 : vector<8x1xi1> to vector<8x32xi1>
    %67 = arith.select %66, %62, %37 : vector<8x32xi1>, vector<8x32xf32>
    %68 = vector.shape_cast %64 : vector<8x1xi1> to vector<8x1xi1>
    %69 = vector.broadcast %68 : vector<8x1xi1> to vector<8x32xi1>
    %70 = arith.select %69, %60, %40 : vector<8x32xi1>, vector<8x32xf32>
    %c2_i32 = arith.constant 2 : i32
    %c8_i32_20 = arith.constant 8 : i32
    %71 = arith.muli %c2_i32, %c8_i32_20 : i32
    %72 = tpu.assume_multiple %71, 8 : i32
    %73 = arith.index_cast %72 : i32 to index
    %c0_21 = arith.constant 0 : index
    %74 = vector.load %arg6[%73, %c0_21] : memref<64x128xf32, #tpu.memory_space<vmem>>, vector<8x128xf32>
    %75 = arith.truncf %67 : vector<8x32xf32> to vector<8x32xbf16>
    %cst_22 = arith.constant dense<0.000000e+00> : vector<8x128xf32>
    %76 = tpu.matmul %75, %1, %cst_22 {dimension_numbers = #tpu.dot_dimension_numbers<[1], [0], [0], [1], [0, 0, 1, 1], [], []>} : vector<8x32xbf16>, vector<32x128xbf16>, vector<8x128xf32> -> vector<8x128xf32>
    %77 = arith.addf %74, %76 : vector<8x128xf32>
    %78 = arith.negf %77 : vector<8x128xf32>
    %79 = math.exp %78 : vector<8x128xf32>
    %cst_23 = arith.constant 1.000000e+00 : f32
    %80 = vector.broadcast %cst_23 : f32 to vector<8x128xf32>
    %81 = arith.addf %80, %79 : vector<8x128xf32>
    %82 = arith.divf %80, %81 : vector<8x128xf32>
    %83 = vector.extract_strided_slice %82 {offsets = [0, 0], sizes = [8, 32], strides = [1, 1]} : vector<8x128xf32> to vector<8x32xf32>
    %84 = vector.extract_strided_slice %82 {offsets = [0, 32], sizes = [8, 32], strides = [1, 1]} : vector<8x128xf32> to vector<8x32xf32>
    %85 = vector.extract_strided_slice %82 {offsets = [0, 96], sizes = [8, 32], strides = [1, 1]} : vector<8x128xf32> to vector<8x32xf32>
    %86 = vector.extract_strided_slice %77 {offsets = [0, 64], sizes = [8, 32], strides = [1, 1]} : vector<8x128xf32> to vector<8x32xf32>
    %87 = math.tanh %86 : vector<8x32xf32>
    %88 = arith.mulf %84, %70 : vector<8x32xf32>
    %89 = arith.mulf %83, %87 : vector<8x32xf32>
    %90 = arith.addf %88, %89 : vector<8x32xf32>
    %91 = math.tanh %90 : vector<8x32xf32>
    %92 = arith.mulf %85, %91 : vector<8x32xf32>
    %93 = vector.broadcast %c2_i32 : i32 to vector<8x1xi32>
    %94 = arith.cmpi sgt, %0, %93 : vector<8x1xi32>
    %95 = vector.shape_cast %94 : vector<8x1xi1> to vector<8x1xi1>
    %96 = vector.broadcast %95 : vector<8x1xi1> to vector<8x32xi1>
    %97 = arith.select %96, %92, %67 : vector<8x32xi1>, vector<8x32xf32>
    %98 = vector.shape_cast %94 : vector<8x1xi1> to vector<8x1xi1>
    %99 = vector.broadcast %98 : vector<8x1xi1> to vector<8x32xi1>
    %100 = arith.select %99, %90, %70 : vector<8x32xi1>, vector<8x32xf32>
    %c3_i32 = arith.constant 3 : i32
    %c8_i32_24 = arith.constant 8 : i32
    %101 = arith.muli %c3_i32, %c8_i32_24 : i32
    %102 = tpu.assume_multiple %101, 8 : i32
    %103 = arith.index_cast %102 : i32 to index
    %c0_25 = arith.constant 0 : index
    %104 = vector.load %arg6[%103, %c0_25] : memref<64x128xf32, #tpu.memory_space<vmem>>, vector<8x128xf32>
    %105 = arith.truncf %97 : vector<8x32xf32> to vector<8x32xbf16>
    %cst_26 = arith.constant dense<0.000000e+00> : vector<8x128xf32>
    %106 = tpu.matmul %105, %1, %cst_26 {dimension_numbers = #tpu.dot_dimension_numbers<[1], [0], [0], [1], [0, 0, 1, 1], [], []>} : vector<8x32xbf16>, vector<32x128xbf16>, vector<8x128xf32> -> vector<8x128xf32>
    %107 = arith.addf %104, %106 : vector<8x128xf32>
    %108 = arith.negf %107 : vector<8x128xf32>
    %109 = math.exp %108 : vector<8x128xf32>
    %cst_27 = arith.constant 1.000000e+00 : f32
    %110 = vector.broadcast %cst_27 : f32 to vector<8x128xf32>
    %111 = arith.addf %110, %109 : vector<8x128xf32>
    %112 = arith.divf %110, %111 : vector<8x128xf32>
    %113 = vector.extract_strided_slice %112 {offsets = [0, 0], sizes = [8, 32], strides = [1, 1]} : vector<8x128xf32> to vector<8x32xf32>
    %114 = vector.extract_strided_slice %112 {offsets = [0, 32], sizes = [8, 32], strides = [1, 1]} : vector<8x128xf32> to vector<8x32xf32>
    %115 = vector.extract_strided_slice %112 {offsets = [0, 96], sizes = [8, 32], strides = [1, 1]} : vector<8x128xf32> to vector<8x32xf32>
    %116 = vector.extract_strided_slice %107 {offsets = [0, 64], sizes = [8, 32], strides = [1, 1]} : vector<8x128xf32> to vector<8x32xf32>
    %117 = math.tanh %116 : vector<8x32xf32>
    %118 = arith.mulf %114, %100 : vector<8x32xf32>
    %119 = arith.mulf %113, %117 : vector<8x32xf32>
    %120 = arith.addf %118, %119 : vector<8x32xf32>
    %121 = math.tanh %120 : vector<8x32xf32>
    %122 = arith.mulf %115, %121 : vector<8x32xf32>
    %123 = vector.broadcast %c3_i32 : i32 to vector<8x1xi32>
    %124 = arith.cmpi sgt, %0, %123 : vector<8x1xi32>
    %125 = vector.shape_cast %124 : vector<8x1xi1> to vector<8x1xi1>
    %126 = vector.broadcast %125 : vector<8x1xi1> to vector<8x32xi1>
    %127 = arith.select %126, %122, %97 : vector<8x32xi1>, vector<8x32xf32>
    %128 = vector.shape_cast %124 : vector<8x1xi1> to vector<8x1xi1>
    %129 = vector.broadcast %128 : vector<8x1xi1> to vector<8x32xi1>
    %130 = arith.select %129, %120, %100 : vector<8x32xi1>, vector<8x32xf32>
    %c4_i32 = arith.constant 4 : i32
    %c8_i32_28 = arith.constant 8 : i32
    %131 = arith.muli %c4_i32, %c8_i32_28 : i32
    %132 = tpu.assume_multiple %131, 8 : i32
    %133 = arith.index_cast %132 : i32 to index
    %c0_29 = arith.constant 0 : index
    %134 = vector.load %arg6[%133, %c0_29] : memref<64x128xf32, #tpu.memory_space<vmem>>, vector<8x128xf32>
    %135 = arith.truncf %127 : vector<8x32xf32> to vector<8x32xbf16>
    %cst_30 = arith.constant dense<0.000000e+00> : vector<8x128xf32>
    %136 = tpu.matmul %135, %1, %cst_30 {dimension_numbers = #tpu.dot_dimension_numbers<[1], [0], [0], [1], [0, 0, 1, 1], [], []>} : vector<8x32xbf16>, vector<32x128xbf16>, vector<8x128xf32> -> vector<8x128xf32>
    %137 = arith.addf %134, %136 : vector<8x128xf32>
    %138 = arith.negf %137 : vector<8x128xf32>
    %139 = math.exp %138 : vector<8x128xf32>
    %cst_31 = arith.constant 1.000000e+00 : f32
    %140 = vector.broadcast %cst_31 : f32 to vector<8x128xf32>
    %141 = arith.addf %140, %139 : vector<8x128xf32>
    %142 = arith.divf %140, %141 : vector<8x128xf32>
    %143 = vector.extract_strided_slice %142 {offsets = [0, 0], sizes = [8, 32], strides = [1, 1]} : vector<8x128xf32> to vector<8x32xf32>
    %144 = vector.extract_strided_slice %142 {offsets = [0, 32], sizes = [8, 32], strides = [1, 1]} : vector<8x128xf32> to vector<8x32xf32>
    %145 = vector.extract_strided_slice %142 {offsets = [0, 96], sizes = [8, 32], strides = [1, 1]} : vector<8x128xf32> to vector<8x32xf32>
    %146 = vector.extract_strided_slice %137 {offsets = [0, 64], sizes = [8, 32], strides = [1, 1]} : vector<8x128xf32> to vector<8x32xf32>
    %147 = math.tanh %146 : vector<8x32xf32>
    %148 = arith.mulf %144, %130 : vector<8x32xf32>
    %149 = arith.mulf %143, %147 : vector<8x32xf32>
    %150 = arith.addf %148, %149 : vector<8x32xf32>
    %151 = math.tanh %150 : vector<8x32xf32>
    %152 = arith.mulf %145, %151 : vector<8x32xf32>
    %153 = vector.broadcast %c4_i32 : i32 to vector<8x1xi32>
    %154 = arith.cmpi sgt, %0, %153 : vector<8x1xi32>
    %155 = vector.shape_cast %154 : vector<8x1xi1> to vector<8x1xi1>
    %156 = vector.broadcast %155 : vector<8x1xi1> to vector<8x32xi1>
    %157 = arith.select %156, %152, %127 : vector<8x32xi1>, vector<8x32xf32>
    %158 = vector.shape_cast %154 : vector<8x1xi1> to vector<8x1xi1>
    %159 = vector.broadcast %158 : vector<8x1xi1> to vector<8x32xi1>
    %160 = arith.select %159, %150, %130 : vector<8x32xi1>, vector<8x32xf32>
    %c5_i32 = arith.constant 5 : i32
    %c8_i32_32 = arith.constant 8 : i32
    %161 = arith.muli %c5_i32, %c8_i32_32 : i32
    %162 = tpu.assume_multiple %161, 8 : i32
    %163 = arith.index_cast %162 : i32 to index
    %c0_33 = arith.constant 0 : index
    %164 = vector.load %arg6[%163, %c0_33] : memref<64x128xf32, #tpu.memory_space<vmem>>, vector<8x128xf32>
    %165 = arith.truncf %157 : vector<8x32xf32> to vector<8x32xbf16>
    %cst_34 = arith.constant dense<0.000000e+00> : vector<8x128xf32>
    %166 = tpu.matmul %165, %1, %cst_34 {dimension_numbers = #tpu.dot_dimension_numbers<[1], [0], [0], [1], [0, 0, 1, 1], [], []>} : vector<8x32xbf16>, vector<32x128xbf16>, vector<8x128xf32> -> vector<8x128xf32>
    %167 = arith.addf %164, %166 : vector<8x128xf32>
    %168 = arith.negf %167 : vector<8x128xf32>
    %169 = math.exp %168 : vector<8x128xf32>
    %cst_35 = arith.constant 1.000000e+00 : f32
    %170 = vector.broadcast %cst_35 : f32 to vector<8x128xf32>
    %171 = arith.addf %170, %169 : vector<8x128xf32>
    %172 = arith.divf %170, %171 : vector<8x128xf32>
    %173 = vector.extract_strided_slice %172 {offsets = [0, 0], sizes = [8, 32], strides = [1, 1]} : vector<8x128xf32> to vector<8x32xf32>
    %174 = vector.extract_strided_slice %172 {offsets = [0, 32], sizes = [8, 32], strides = [1, 1]} : vector<8x128xf32> to vector<8x32xf32>
    %175 = vector.extract_strided_slice %172 {offsets = [0, 96], sizes = [8, 32], strides = [1, 1]} : vector<8x128xf32> to vector<8x32xf32>
    %176 = vector.extract_strided_slice %167 {offsets = [0, 64], sizes = [8, 32], strides = [1, 1]} : vector<8x128xf32> to vector<8x32xf32>
    %177 = math.tanh %176 : vector<8x32xf32>
    %178 = arith.mulf %174, %160 : vector<8x32xf32>
    %179 = arith.mulf %173, %177 : vector<8x32xf32>
    %180 = arith.addf %178, %179 : vector<8x32xf32>
    %181 = math.tanh %180 : vector<8x32xf32>
    %182 = arith.mulf %175, %181 : vector<8x32xf32>
    %183 = vector.broadcast %c5_i32 : i32 to vector<8x1xi32>
    %184 = arith.cmpi sgt, %0, %183 : vector<8x1xi32>
    %185 = vector.shape_cast %184 : vector<8x1xi1> to vector<8x1xi1>
    %186 = vector.broadcast %185 : vector<8x1xi1> to vector<8x32xi1>
    %187 = arith.select %186, %182, %157 : vector<8x32xi1>, vector<8x32xf32>
    %188 = vector.shape_cast %184 : vector<8x1xi1> to vector<8x1xi1>
    %189 = vector.broadcast %188 : vector<8x1xi1> to vector<8x32xi1>
    %190 = arith.select %189, %180, %160 : vector<8x32xi1>, vector<8x32xf32>
    %c6_i32 = arith.constant 6 : i32
    %c8_i32_36 = arith.constant 8 : i32
    %191 = arith.muli %c6_i32, %c8_i32_36 : i32
    %192 = tpu.assume_multiple %191, 8 : i32
    %193 = arith.index_cast %192 : i32 to index
    %c0_37 = arith.constant 0 : index
    %194 = vector.load %arg6[%193, %c0_37] : memref<64x128xf32, #tpu.memory_space<vmem>>, vector<8x128xf32>
    %195 = arith.truncf %187 : vector<8x32xf32> to vector<8x32xbf16>
    %cst_38 = arith.constant dense<0.000000e+00> : vector<8x128xf32>
    %196 = tpu.matmul %195, %1, %cst_38 {dimension_numbers = #tpu.dot_dimension_numbers<[1], [0], [0], [1], [0, 0, 1, 1], [], []>} : vector<8x32xbf16>, vector<32x128xbf16>, vector<8x128xf32> -> vector<8x128xf32>
    %197 = arith.addf %194, %196 : vector<8x128xf32>
    %198 = arith.negf %197 : vector<8x128xf32>
    %199 = math.exp %198 : vector<8x128xf32>
    %cst_39 = arith.constant 1.000000e+00 : f32
    %200 = vector.broadcast %cst_39 : f32 to vector<8x128xf32>
    %201 = arith.addf %200, %199 : vector<8x128xf32>
    %202 = arith.divf %200, %201 : vector<8x128xf32>
    %203 = vector.extract_strided_slice %202 {offsets = [0, 0], sizes = [8, 32], strides = [1, 1]} : vector<8x128xf32> to vector<8x32xf32>
    %204 = vector.extract_strided_slice %202 {offsets = [0, 32], sizes = [8, 32], strides = [1, 1]} : vector<8x128xf32> to vector<8x32xf32>
    %205 = vector.extract_strided_slice %202 {offsets = [0, 96], sizes = [8, 32], strides = [1, 1]} : vector<8x128xf32> to vector<8x32xf32>
    %206 = vector.extract_strided_slice %197 {offsets = [0, 64], sizes = [8, 32], strides = [1, 1]} : vector<8x128xf32> to vector<8x32xf32>
    %207 = math.tanh %206 : vector<8x32xf32>
    %208 = arith.mulf %204, %190 : vector<8x32xf32>
    %209 = arith.mulf %203, %207 : vector<8x32xf32>
    %210 = arith.addf %208, %209 : vector<8x32xf32>
    %211 = math.tanh %210 : vector<8x32xf32>
    %212 = arith.mulf %205, %211 : vector<8x32xf32>
    %213 = vector.broadcast %c6_i32 : i32 to vector<8x1xi32>
    %214 = arith.cmpi sgt, %0, %213 : vector<8x1xi32>
    %215 = vector.shape_cast %214 : vector<8x1xi1> to vector<8x1xi1>
    %216 = vector.broadcast %215 : vector<8x1xi1> to vector<8x32xi1>
    %217 = arith.select %216, %212, %187 : vector<8x32xi1>, vector<8x32xf32>
    %218 = vector.shape_cast %214 : vector<8x1xi1> to vector<8x1xi1>
    %219 = vector.broadcast %218 : vector<8x1xi1> to vector<8x32xi1>
    %220 = arith.select %219, %210, %190 : vector<8x32xi1>, vector<8x32xf32>
    %c7_i32 = arith.constant 7 : i32
    %c8_i32_40 = arith.constant 8 : i32
    %221 = arith.muli %c7_i32, %c8_i32_40 : i32
    %222 = tpu.assume_multiple %221, 8 : i32
    %223 = arith.index_cast %222 : i32 to index
    %c0_41 = arith.constant 0 : index
    %224 = vector.load %arg6[%223, %c0_41] : memref<64x128xf32, #tpu.memory_space<vmem>>, vector<8x128xf32>
    %225 = arith.truncf %217 : vector<8x32xf32> to vector<8x32xbf16>
    %cst_42 = arith.constant dense<0.000000e+00> : vector<8x128xf32>
    %226 = tpu.matmul %225, %1, %cst_42 {dimension_numbers = #tpu.dot_dimension_numbers<[1], [0], [0], [1], [0, 0, 1, 1], [], []>} : vector<8x32xbf16>, vector<32x128xbf16>, vector<8x128xf32> -> vector<8x128xf32>
    %227 = arith.addf %224, %226 : vector<8x128xf32>
    %228 = arith.negf %227 : vector<8x128xf32>
    %229 = math.exp %228 : vector<8x128xf32>
    %cst_43 = arith.constant 1.000000e+00 : f32
    %230 = vector.broadcast %cst_43 : f32 to vector<8x128xf32>
    %231 = arith.addf %230, %229 : vector<8x128xf32>
    %232 = arith.divf %230, %231 : vector<8x128xf32>
    %233 = vector.extract_strided_slice %232 {offsets = [0, 0], sizes = [8, 32], strides = [1, 1]} : vector<8x128xf32> to vector<8x32xf32>
    %234 = vector.extract_strided_slice %232 {offsets = [0, 32], sizes = [8, 32], strides = [1, 1]} : vector<8x128xf32> to vector<8x32xf32>
    %235 = vector.extract_strided_slice %232 {offsets = [0, 96], sizes = [8, 32], strides = [1, 1]} : vector<8x128xf32> to vector<8x32xf32>
    %236 = vector.extract_strided_slice %227 {offsets = [0, 64], sizes = [8, 32], strides = [1, 1]} : vector<8x128xf32> to vector<8x32xf32>
    %237 = math.tanh %236 : vector<8x32xf32>
    %238 = arith.mulf %234, %220 : vector<8x32xf32>
    %239 = arith.mulf %233, %237 : vector<8x32xf32>
    %240 = arith.addf %238, %239 : vector<8x32xf32>
    %241 = math.tanh %240 : vector<8x32xf32>
    %242 = arith.mulf %235, %241 : vector<8x32xf32>
    %243 = vector.broadcast %c7_i32 : i32 to vector<8x1xi32>
    %244 = arith.cmpi sgt, %0, %243 : vector<8x1xi32>
    %245 = vector.shape_cast %244 : vector<8x1xi1> to vector<8x1xi1>
    %246 = vector.broadcast %245 : vector<8x1xi1> to vector<8x32xi1>
    %247 = arith.select %246, %242, %217 : vector<8x32xi1>, vector<8x32xf32>
    %248 = vector.shape_cast %244 : vector<8x1xi1> to vector<8x1xi1>
    %249 = vector.broadcast %248 : vector<8x1xi1> to vector<8x32xi1>
    %250 = arith.select %249, %240, %220 : vector<8x32xi1>, vector<8x32xf32>
    %c8_i32_44 = arith.constant 8 : i32
    %c0_45 = arith.constant 0 : index
    %c0_46 = arith.constant 0 : index
    %251 = vector.load %arg5[%c0_45, %c0_46] : memref<8x32xf32, #tpu.memory_space<vmem>>, vector<8x32xf32>
    tpu.vector_store %arg5[%c0_45, %c0_46], %247 {strides = array<i32>} : memref<8x32xf32, #tpu.memory_space<vmem>>, vector<8x32xf32>,
    return
  }
}

</mosaic_0001>

<bundles_post_ra>
// kernel: tpu_custom_call.1
= control target key start
LH: loop header
LB: loop body
LE: loop exit
PB: predicated region body
PF: predicated region fallthrough
CT: control target
= control target key end

     0   :  { %v1083_v1 = vmov 0.0   ;;  %vm78_vm0 = vcmask 261120   ;;  %vm1084_vm1 = vmmov 0   ;;  %v1085_v7 = vmov 0   ;;  %s1320_s0 = inlined_call_operand.vmem [shape: s32[8,1], index: 0, kind: input, shape index: {}]   ;;  %s1321_s1 = inlined_call_operand.vmem [shape: bf16[64,32], index: 1, kind: input, shape index: {}]   ;;  %s1322_s2 = inlined_call_operand.vmem [shape: bf16[32,128], index: 2, kind: input, shape index: {}]   ;;  %s1323_s3 = inlined_call_operand.vmem [shape: bf16[32,128], index: 3, kind: input, shape index: {}]   ;;  %s1324_s4 = inlined_call_operand.vmem [shape: f32[1,128], index: 4, kind: input, shape index: {}]   ;;  %s1325_s5 = inlined_call_operand.hbm [shape: f32[8,32], index: 5, kind: output, shape index: {}]  }
   0x1   :  { %v987_v0 = vld [vmem:[%s1322_s2] sm:$0xff]   ;;  %915 = vmatprep.subr.bf16.mxu1 %v1083_v1  ;;  %v989_v3 = vld [vmem:[%s1322_s2 + $0x8] sm:$0xff]   ;;  %919 = vmatprep.mubr.msk.bf16.mxu1 %vm1084_vm1, %v1083_v1 }
   0x2   :  { %v1126_v2 = vld [vmem:[%s1323_s3] sm:$0xff]   ;;  %903 = vmatprep.subr.bf16.mxu0 %v987_v0  ;;  %v1135_v4 = vld [vmem:[%s1323_s3 + $0x8] sm:$0xff]   ;;  %985 = vset.pattern.permute.xlu1 %v1085_v7 }
   0x3   :  { %904 = vmatpush3.bf16.msra.mxu0 %v987_v0  ;;  %916 = vmatpush3.bf16.msra.mxu1 %v1126_v2  ;;  %v991_v5 = vld [vmem:[%s1321_s1] sm:$0xff]   ;;  %v992_v6 = vld [vmem:[%s1321_s1 + $0x8] sm:$0xff]  }
   0x4   :  { %905 = vmatprep.subr.bf16.mxu0 %v989_v3  ;;  %917 = vmatprep.subr.bf16.mxu1 %v1083_v1 }
   0x5   :  { %907 = vmatprep.mubr.msk.bf16.mxu0 %vm78_vm0, %v991_v5  ;;  %986 = vset.pattern.permute.xlu0 %v1085_v7 }
   0x7   :  { %906 = vmatpush3.bf16.msra.mxu0 %v989_v3  ;;  %918 = vmatpush3.bf16.msra.mxu1 %v1135_v4 }
   0x8   :  { %10 = vsyncpa [#allocation4], 0  ;;  %923 = vmatprep.subr.bf16.mxu1 %v1083_v1  ;;  %931 = vmatprep.subr.bf16.mxu0 %v1083_v1  ;;  %v1167_v8 = vld [vmem:[%s1320_s0] sm:$0xff]  ;;  %s1086_s0 = smov 64   ;;  %v993_v56 = vld [vmem:[%s1321_s1 + $0x10] sm:$0xff]  }
   0x9   :  { %vm245_vm2 = vcmp.gt.s32.totalorder %v1167_v8, 0  ;;  %v1174_v10 = vld [vmem:[%s1324_s4] ss:$0 sm:$0xff]  ;;  %s1087_s4 = smov 32   ;;  %vm327_vm4 = vcmp.gt.s32.totalorder %v1167_v8, 1  ;;  %v994_v57 = vld [vmem:[%s1321_s1 + $0x18] sm:$0xff]  }
   0xa   :  { %908 = vmatmul.mubr.msk.bf16.vlgmr.msra.gmra.mrb[0].mxu0 %vm78_vm0, %v992_v6  ;;  %920 = vmatmul.mubr.bf16.vlgmr.msra.gmra.mrb[0].mxu1 %v1085_v7  ;;  %v246_v9 = vsel %vm245_vm2, 1, %v1085_v7  ;;  %v328_v45 = vsel %vm327_vm4, 1, %v1085_v7  ;;  %vm409_vm6 = vcmp.gt.s32.totalorder %v1167_v8, 2  ;;  %vm491_vm8 = vcmp.gt.s32.totalorder %v1167_v8, 3  ;;  %s1088_s1 = smov [#allocation3]  }
   0xb   :  { %924 = vmatpush3.bf16.msra.mxu1 %v1126_v2  ;;  %927 = vmatprep.mubr.msk.bf16.mxu1 %vm1084_vm1, %v1083_v1  ;;  %vm573_vm10 = vcmp.gt.s32.totalorder %v1167_v8, 4  ;;  %vm655_vm12 = vcmp.gt.s32.totalorder %v1167_v8, 5  ;;  %vm737_vm14 = vcmp.gt.s32.totalorder %v1167_v8, 6  ;;  %s837_s11 = sshll.u32 %s1088_s1, 4  ;;  %s838_s11 = int_to_ptr.vmem [resolvable:$true] %s837_s11 }
   0xc   :  { %925 = vmatprep.subr.bf16.mxu1 %v1083_v1  ;;  %932 = vmatpush3.bf16.msra.mxu0 %v1126_v2  ;;  %s1059_s12 = scalar_lea.vmem %s838_s11, 128  ;;  %p1064_p1 = scmp.lt.s32.totalorder %s838_s11, %s838_s11 }
   0xd   :  { %933 = vmatprep.subr.bf16.mxu0 %v1083_v1  ;;  %248 = vperm.xlu1 %985, %v246_v9   ;;  %p1060_p0 = scmp.ne.s32.totalorder %s838_s11, %s1059_s12  ;;  %p1065_p2 = scmp.lt.s32.totalorder %s1059_s12, %s1059_s12 }
   0xe   :  { %911 = vmatprep.mubr.msk.bf16.mxu0 %vm78_vm0, %v993_v56 }
   0xf   :  { %926 = vmatpush3.bf16.msra.mxu1 %v1135_v4  ;;  %p1066_p3 = por %p1065_p2, %p1064_p1 }
  0x10   :  { %934 = vmatpush3.bf16.msra.mxu0 %v1135_v4  ;;  %939 = vmatprep.subr.bf16.mxu1 %v1083_v1 }
  0x11   :  { %947 = vmatprep.subr.bf16.mxu0 %v1083_v1  ;;  %p1067_p4 = pnand %p1066_p3, %p1060_p0 }
  0x12   :  { %912 = vmatmul.mubr.msk.bf16.gmra.mrb[4].mxu0 %vm78_vm0, %v994_v57 }
  0x13   :  { %935 = vmatprep.mubr.msk.bf16.mxu0 %vm1084_vm1, %v1083_v1 }
  0x8c   :  { %v249_v32 = vpop.permute.xlu1 %248 }
  0x8d   :  { %vm250_vm3 = vcmp.eq.s32.totalorder %v249_v32, 1 }
  0xdd   :  { %v1176_v11 = vpop.f32.mrb[0].mxu0  ;;  %v214_v12 = vpop.f32.mrb[0].mxu1 }
  0xde   :  { %v125_v13 = vpop.f32.mrb[1].mxu0  ;;  %v921_v14 = vpop.f32.mrb[1].mxu1 }
  0xdf   :  { %v126_v15 = vadd.f32 %v1174_v10, %v125_v13  ;;  %v1179_v16 = vpop.f32.mrb[2].mxu0  ;;  %v217_v17 = vpop.f32.mrb[2].mxu1 }
  0xe0   :  { %v128_v18 = vpop.f32.mrb[3].mxu0  ;;  %v922_v19 = vpop.f32.mrb[3].mxu1 }
  0xe1   :  { %v220_v20 = vadd.f32 %v214_v12, %v126_v15  ;;  %v129_v38 = vadd.f32 %v1174_v10, %v128_v18  ;;  %v134_v12 = vadd.f32 %v1176_v11, %v1174_v10 }
  0xe3   :  { %995 = vtanh.f32 %v220_v20  ;;  %v858_v22 = vmul.f32 -1.442695, %v220_v20  ;;  %v410_v20 = vsel %vm409_vm6, 1, %v1085_v7 }
  0xe5   :  { %997 = vpow2.f32 %v858_v22  ;;  %v1212_v0 = vpop.f32.mrb[4].mxu0 }
  0xe6   :  { %v1214_v3 = vpop.f32.mrb[5].mxu0 }
  0xe7   :  { %v1216_v5 = vpop.f32.mrb[6].mxu0 }
  0xe8   :  { %v1218_v6 = vpop.f32.mrb[7].mxu0 }
  0xed   :  { %v996_v21 = vpop.eup %995 }
  0xee   :  { %230 = vrot.lane.b32.xlu0 %v996_v21, %s1086_s0 }
  0xef   :  { %v998_v23 = vpop.eup %997 }
  0xf0   :  { %v224_v24 = vadd.f32 1.0, %v998_v23 }
  0xf2   :  { %999 = vrcp.f32 %v224_v24 }
  0xfc   :  { %v1000_v25 = vpop.eup %999 }
  0xfd   :  { %v228_v28 = vmul.f32 0.0, %v1000_v25 }
 0x160   :  { %v231_v26 = vpop.permute.xlu0 %230 }
 0x161   :  { %v233_v27 = vmul.f32 %v1000_v25, %v231_v26 }
 0x163   :  { %235 = vrot.lane.b32.xlu0 %v233_v27, %s1087_s4 }
 0x1d5   :  { %v236_v29 = vpop.permute.xlu0 %235 }
 0x1d6   :  { %v238_v30 = vadd.f32 %v236_v29, %v228_v28 }
 0x1d8   :  { %1001 = vtanh.f32 %v238_v30  ;;  %v252_v52 = vsel %vm250_vm3, %v238_v30, 0.0 }
 0x1e2   :  { %v1002_v31 = vpop.eup %1001 }
 0x1e3   :  { %241 = vrot.lane.b32.xlu1 %v1002_v31, %s1086_s0 }
 0x255   :  { %v242_v33 = vpop.permute.xlu1 %241 }
 0x256   :  { %v244_v34 = vmul.f32 %v1000_v25, %v242_v33 }
 0x258   :  { %v251_v35 = vsel %vm250_vm3, %v244_v34, 0.0 }
 0x259   :  { %v255_v36 = vpack.c.bf16 %v251_v35, %v251_v35 }
 0x25b   :  { %257 = vrot.lane.b32.xlu0 %v255_v36, %s1087_s4 }
 0x2cd   :  { %v258_v37 = vpop.permute.xlu0 %257 }
 0x2ce   :  { %928 = vmatmul.mubr.msk.bf16.vlgmr.msra.gmra.mrb[4].mxu1 %vm78_vm0, %v258_v37  ;;  %v137_v37 = vadd.f32 %v1179_v16, %v1174_v10 }
 0x2cf   :  { %940 = vmatpush3.bf16.msra.mxu1 %v1126_v2  ;;  %943 = vmatprep.mubr.msk.bf16.mxu1 %vm1084_vm1, %v1083_v1 }
 0x2d0   :  { %941 = vmatprep.subr.bf16.mxu1 %v1083_v1 }
 0x2d3   :  { %942 = vmatpush3.bf16.msra.mxu1 %v1135_v4 }
 0x2d4   :  { %955 = vmatprep.subr.bf16.mxu1 %v1083_v1 }
 0x3a1   :  { %v296_v39 = vpop.f32.mrb[4].mxu1 }
 0x3a2   :  { %v302_v40 = vadd.f32 %v296_v39, %v129_v38  ;;  %v929_v41 = vpop.f32.mrb[5].mxu1 }
 0x3a3   :  { %v299_v42 = vpop.f32.mrb[6].mxu1 }
 0x3a4   :  { %1003 = vtanh.f32 %v302_v40  ;;  %v930_v43 = vpop.f32.mrb[7].mxu1  ;;  %v860_v46 = vmul.f32 -1.442695, %v302_v40 }
 0x3a6   :  { %1005 = vpow2.f32 %v860_v46 }
 0x3ae   :  { %v1004_v44 = vpop.eup %1003 }
 0x3af   :  { %312 = vrot.lane.b32.xlu1 %v1004_v44, %s1086_s0  ;;  %v492_v44 = vsel %vm491_vm8, 1, %v1085_v7 }
 0x3b0   :  { %v1006_v47 = vpop.eup %1005 }
 0x3b1   :  { %v306_v48 = vadd.f32 1.0, %v1006_v47 }
 0x3b3   :  { %330 = vperm.xlu1 %985, %v328_v45   ;;  %1007 = vrcp.f32 %v306_v48 }
 0x3bd   :  { %v1008_v49 = vpop.eup %1007 }
 0x3be   :  { %v310_v53 = vmul.f32 %v1008_v49, %v252_v52 }
 0x421   :  { %v313_v50 = vpop.permute.xlu1 %312 }
 0x422   :  { %v315_v51 = vmul.f32 %v1008_v49, %v313_v50 }
 0x424   :  { %317 = vrot.lane.b32.xlu0 %v315_v51, %s1087_s4 }
 0x432   :  { %v331_v59 = vpop.permute.xlu1 %330 }
 0x433   :  { %vm332_vm5 = vcmp.eq.s32.totalorder %v331_v59, 1 }
 0x496   :  { %v318_v54 = vpop.permute.xlu0 %317 }
 0x497   :  { %v320_v55 = vadd.f32 %v318_v54, %v310_v53 }
 0x499   :  { %1009 = vtanh.f32 %v320_v55  ;;  %v334_v26 = vsel %vm332_vm5, %v320_v55, %v252_v52 }
 0x4a3   :  { %v1010_v58 = vpop.eup %1009 }
 0x4a4   :  { %323 = vrot.lane.b32.xlu0 %v1010_v58, %s1086_s0 }
 0x516   :  { %v324_v60 = vpop.permute.xlu0 %323 }
 0x517   :  { %v326_v61 = vmul.f32 %v1008_v49, %v324_v60 }
 0x519   :  { %v333_v62 = vsel %vm332_vm5, %v326_v61, %v251_v35  ;;  %v142_v61 = vadd.f32 %v1174_v10, %v1214_v3 }
 0x51a   :  { %v337_v63 = vpack.c.bf16 %v333_v62, %v333_v62 }
 0x51c   :  { %339 = vrot.lane.b32.xlu1 %v337_v63, %s1087_s4 }
 0x58e   :  { %v340_v9 = vpop.permute.xlu1 %339 }
 0x58f   :  { %936 = vmatmul.mubr.msk.bf16.vlgmr.msra.gmra.mrb[8].mxu0 %vm78_vm0, %v340_v9 }
 0x590   :  { %948 = vmatpush3.bf16.msra.mxu0 %v1126_v2  ;;  %951 = vmatprep.mubr.msk.bf16.mxu0 %vm1084_vm1, %v1083_v1 }
 0x591   :  { %949 = vmatprep.subr.bf16.mxu0 %v1083_v1 }
 0x594   :  { %950 = vmatpush3.bf16.msra.mxu0 %v1135_v4 }
 0x595   :  { %963 = vmatprep.subr.bf16.mxu0 %v1083_v1 }
 0x662   :  { %v378_v13 = vpop.f32.mrb[8].mxu0 }
 0x663   :  { %v384_v14 = vadd.f32 %v378_v13, %v134_v12  ;;  %v937_v15 = vpop.f32.mrb[9].mxu0 }
 0x664   :  { %v381_v17 = vpop.f32.mrb[10].mxu0  ;;  %v574_v15 = vsel %vm573_vm10, 1, %v1085_v7 }
 0x665   :  { %1011 = vtanh.f32 %v384_v14  ;;  %v938_v18 = vpop.f32.mrb[11].mxu0  ;;  %v862_v21 = vmul.f32 -1.442695, %v384_v14 }
 0x667   :  { %1013 = vpow2.f32 %v862_v21 }
 0x66f   :  { %v1012_v19 = vpop.eup %1011 }
 0x670   :  { %394 = vrot.lane.b32.xlu0 %v1012_v19, %s1086_s0 }
 0x671   :  { %v1014_v22 = vpop.eup %1013 }
 0x672   :  { %v388_v23 = vadd.f32 1.0, %v1014_v22 }
 0x674   :  { %412 = vperm.xlu0 %986, %v410_v20   ;;  %1015 = vrcp.f32 %v388_v23 }
 0x67e   :  { %v1016_v11 = vpop.eup %1015 }
 0x67f   :  { %v392_v27 = vmul.f32 %v1016_v11, %v334_v26 }
 0x6e2   :  { %v395_v24 = vpop.permute.xlu0 %394 }
 0x6e3   :  { %v397_v25 = vmul.f32 %v1016_v11, %v395_v24 }
 0x6e5   :  { %399 = vrot.lane.b32.xlu1 %v397_v25, %s1087_s4 }
 0x6f3   :  { %v413_v31 = vpop.permute.xlu0 %412 }
 0x6f4   :  { %vm414_vm7 = vcmp.eq.s32.totalorder %v413_v31, 1 }
 0x757   :  { %v400_v28 = vpop.permute.xlu1 %399 }
 0x758   :  { %v402_v29 = vadd.f32 %v400_v28, %v392_v27 }
 0x75a   :  { %1017 = vtanh.f32 %v402_v29  ;;  %v416_v50 = vsel %vm414_vm7, %v402_v29, %v334_v26 }
 0x764   :  { %v1018_v30 = vpop.eup %1017 }
 0x765   :  { %405 = vrot.lane.b32.xlu1 %v1018_v30, %s1086_s0 }
 0x7d7   :  { %v406_v32 = vpop.permute.xlu1 %405 }
 0x7d8   :  { %v408_v33 = vmul.f32 %v1016_v11, %v406_v32  ;;  %v145_v32 = vadd.f32 %v1174_v10, %v1218_v6 }
 0x7da   :  { %v415_v34 = vsel %vm414_vm7, %v408_v33, %v333_v62 }
 0x7db   :  { %v419_v35 = vpack.c.bf16 %v415_v34, %v415_v34 }
 0x7dd   :  { %421 = vrot.lane.b32.xlu1 %v419_v35, %s1087_s4 }
 0x84f   :  { %v422_v36 = vpop.permute.xlu1 %421 }
 0x850   :  { %944 = vmatmul.mubr.msk.bf16.vlgmr.msra.gmra.mrb[8].mxu1 %vm78_vm0, %v422_v36 }
 0x851   :  { %956 = vmatpush3.bf16.msra.mxu1 %v1126_v2  ;;  %959 = vmatprep.mubr.msk.bf16.mxu1 %vm1084_vm1, %v1083_v1 }
 0x852   :  { %957 = vmatprep.subr.bf16.mxu1 %v1083_v1 }
 0x855   :  { %958 = vmatpush3.bf16.msra.mxu1 %v1135_v4 }
 0x856   :  { %971 = vmatprep.subr.bf16.mxu1 %v1083_v1 }
 0x923   :  { %v460_v38 = vpop.f32.mrb[8].mxu1 }
 0x924   :  { %v466_v39 = vadd.f32 %v460_v38, %v137_v37  ;;  %v945_v40 = vpop.f32.mrb[9].mxu1 }
 0x925   :  { %v463_v41 = vpop.f32.mrb[10].mxu1 }
 0x926   :  { %1019 = vtanh.f32 %v466_v39  ;;  %v946_v42 = vpop.f32.mrb[11].mxu1  ;;  %v864_v45 = vmul.f32 -1.442695, %v466_v39 }
 0x928   :  { %1021 = vpow2.f32 %v864_v45 }
 0x930   :  { %v1020_v43 = vpop.eup %1019 }
 0x931   :  { %476 = vrot.lane.b32.xlu0 %v1020_v43, %s1086_s0 }
 0x932   :  { %v1022_v46 = vpop.eup %1021 }
 0x933   :  { %v470_v47 = vadd.f32 1.0, %v1022_v46 }
 0x935   :  { %494 = vperm.xlu0 %986, %v492_v44   ;;  %1023 = vrcp.f32 %v470_v47 }
 0x93f   :  { %v1024_v16 = vpop.eup %1023 }
 0x940   :  { %v474_v51 = vmul.f32 %v1024_v16, %v416_v50 }
 0x9a3   :  { %v477_v48 = vpop.permute.xlu0 %476 }
 0x9a4   :  { %v479_v49 = vmul.f32 %v1024_v16, %v477_v48 }
 0x9a6   :  { %481 = vrot.lane.b32.xlu1 %v479_v49, %s1087_s4 }
 0x9b4   :  { %v495_v55 = vpop.permute.xlu0 %494 }
 0x9b5   :  { %vm496_vm9 = vcmp.eq.s32.totalorder %v495_v55, 1 }
 0xa18   :  { %v482_v52 = vpop.permute.xlu1 %481 }
 0xa19   :  { %v484_v53 = vadd.f32 %v482_v52, %v474_v51  ;;  %v150_v52 = vadd.f32 %v1212_v0, %v1174_v10 }
 0xa1b   :  { %1025 = vtanh.f32 %v484_v53  ;;  %v498_v22 = vsel %vm496_vm9, %v484_v53, %v416_v50 }
 0xa25   :  { %v1026_v54 = vpop.eup %1025 }
 0xa26   :  { %487 = vrot.lane.b32.xlu1 %v1026_v54, %s1086_s0 }
 0xa98   :  { %v488_v56 = vpop.permute.xlu1 %487 }
 0xa99   :  { %v490_v57 = vmul.f32 %v1024_v16, %v488_v56 }
 0xa9b   :  { %v497_v58 = vsel %vm496_vm9, %v490_v57, %v415_v34 }
 0xa9c   :  { %v501_v59 = vpack.c.bf16 %v497_v58, %v497_v58 }
 0xa9e   :  { %503 = vrot.lane.b32.xlu0 %v501_v59, %s1087_s4  ;;  %v738_v59 = vsel %vm737_vm14, 1, %v1085_v7 }
 0xb10   :  { %v504_v60 = vpop.permute.xlu0 %503 }
 0xb11   :  { %952 = vmatmul.mubr.msk.bf16.vlgmr.msra.gmra.mrb[12].mxu0 %vm78_vm0, %v504_v60 }
 0xb12   :  { %964 = vmatpush3.bf16.msra.mxu0 %v1126_v2  ;;  %967 = vmatprep.mubr.msk.bf16.mxu0 %vm1084_vm1, %v1083_v1 }
 0xb13   :  { %965 = vmatprep.subr.bf16.mxu0 %v1083_v1 }
 0xb16   :  { %966 = vmatpush3.bf16.msra.mxu0 %v1135_v4 }
 0xbe4   :  { %v542_v62 = vpop.f32.mrb[12].mxu0 }
 0xbe5   :  { %v548_v63 = vadd.f32 %v542_v62, %v142_v61  ;;  %v953_v9 = vpop.f32.mrb[13].mxu0 }
 0xbe6   :  { %v545_v12 = vpop.f32.mrb[14].mxu0 }
 0xbe7   :  { %1027 = vtanh.f32 %v548_v63  ;;  %v954_v13 = vpop.f32.mrb[15].mxu0  ;;  %v866_v17 = vmul.f32 -1.442695, %v548_v63 }
 0xbe9   :  { %1029 = vpow2.f32 %v866_v17 }
 0xbf1   :  { %v1028_v14 = vpop.eup %1027 }
 0xbf2   :  { %558 = vrot.lane.b32.xlu1 %v1028_v14, %s1086_s0 }
 0xbf3   :  { %v1030_v18 = vpop.eup %1029 }
 0xbf4   :  { %v552_v19 = vadd.f32 1.0, %v1030_v18 }
 0xbf6   :  { %576 = vperm.xlu1 %985, %v574_v15   ;;  %1031 = vrcp.f32 %v552_v19 }
 0xc00   :  { %v1032_v3 = vpop.eup %1031 }
 0xc01   :  { %v556_v23 = vmul.f32 %v1032_v3, %v498_v22 }
 0xc64   :  { %v559_v20 = vpop.permute.xlu1 %558 }
 0xc65   :  { %v561_v21 = vmul.f32 %v1032_v3, %v559_v20 }
 0xc67   :  { %563 = vrot.lane.b32.xlu0 %v561_v21, %s1087_s4 }
 0xc75   :  { %v577_v26 = vpop.permute.xlu1 %576 }
 0xc76   :  { %vm578_vm11 = vcmp.eq.s32.totalorder %v577_v26, 1 }
 0xcd9   :  { %v564_v11 = vpop.permute.xlu0 %563 }
 0xcda   :  { %v566_v24 = vadd.f32 %v564_v11, %v556_v23  ;;  %v153_v23 = vadd.f32 %v1216_v5, %v1174_v10 }
 0xcdc   :  { %1033 = vtanh.f32 %v566_v24  ;;  %v580_v42 = vsel %vm578_vm11, %v566_v24, %v498_v22 }
 0xce6   :  { %v1034_v25 = vpop.eup %1033 }
 0xce7   :  { %569 = vrot.lane.b32.xlu0 %v1034_v25, %s1086_s0 }
 0xd59   :  { %v570_v27 = vpop.permute.xlu0 %569 }
 0xd5a   :  { %v572_v28 = vmul.f32 %v1032_v3, %v570_v27 }
 0xd5c   :  { %v579_v29 = vsel %vm578_vm11, %v572_v28, %v497_v58 }
 0xd5d   :  { %v583_v30 = vpack.c.bf16 %v579_v29, %v579_v29 }
 0xd5f   :  { %585 = vrot.lane.b32.xlu1 %v583_v30, %s1087_s4 }
 0xdd1   :  { %v586_v31 = vpop.permute.xlu1 %585 }
 0xdd2   :  { %960 = vmatmul.mubr.msk.bf16.vlgmr.msra.gmra.mrb[12].mxu1 %vm78_vm0, %v586_v31 }
 0xdd3   :  { %972 = vmatpush3.bf16.msra.mxu1 %v1126_v2  ;;  %975 = vmatprep.mubr.msk.bf16.mxu1 %vm1084_vm1, %v1083_v1  ;;  %v656_v2 = vsel %vm655_vm12, 1, %v1085_v7  ;;  %vm819_vm1 = vcmp.gt.s32.totalorder %v1167_v8, 7 }
 0xdd4   :  { %973 = vmatprep.subr.bf16.mxu1 %v1083_v1 }
 0xdd7   :  { %974 = vmatpush3.bf16.msra.mxu1 %v1135_v4 }
 0xea5   :  { %v624_v33 = vpop.f32.mrb[12].mxu1 }
 0xea6   :  { %v630_v34 = vadd.f32 %v624_v33, %v145_v32  ;;  %v961_v35 = vpop.f32.mrb[13].mxu1 }
 0xea7   :  { %v627_v36 = vpop.f32.mrb[14].mxu1 }
 0xea8   :  { %1035 = vtanh.f32 %v630_v34  ;;  %v962_v37 = vpop.f32.mrb[15].mxu1  ;;  %v868_v1 = vmul.f32 -1.442695, %v630_v34 }
 0xeaa   :  { %1037 = vpow2.f32 %v868_v1 }
 0xeb2   :  { %v1036_v38 = vpop.eup %1035 }
 0xeb3   :  { %640 = vrot.lane.b32.xlu0 %v1036_v38, %s1086_s0 }
 0xeb4   :  { %v1038_v4 = vpop.eup %1037 }
 0xeb5   :  { %v634_v39 = vadd.f32 1.0, %v1038_v4 }
 0xeb7   :  { %658 = vperm.xlu0 %986, %v656_v2   ;;  %1039 = vrcp.f32 %v634_v39 }
 0xec1   :  { %v1040_v6 = vpop.eup %1039 }
 0xec2   :  { %v638_v43 = vmul.f32 %v1040_v6, %v580_v42 }
 0xf25   :  { %v641_v40 = vpop.permute.xlu0 %640 }
 0xf26   :  { %v643_v41 = vmul.f32 %v1040_v6, %v641_v40 }
 0xf28   :  { %645 = vrot.lane.b32.xlu1 %v643_v41, %s1087_s4 }
 0xf36   :  { %v659_v47 = vpop.permute.xlu0 %658 }
 0xf37   :  { %vm660_vm13 = vcmp.eq.s32.totalorder %v659_v47, 1 }
 0xf9a   :  { %v646_v44 = vpop.permute.xlu1 %645 }
 0xf9b   :  { %v648_v45 = vadd.f32 %v646_v44, %v638_v43 }
 0xf9d   :  { %1041 = vtanh.f32 %v648_v45  ;;  %v662_v12 = vsel %vm660_vm13, %v648_v45, %v580_v42 }
 0xfa7   :  { %v1042_v46 = vpop.eup %1041 }
 0xfa8   :  { %651 = vrot.lane.b32.xlu1 %v1042_v46, %s1086_s0 }
0x101a   :  { %v652_v16 = vpop.permute.xlu1 %651 }
0x101b   :  { %v654_v48 = vmul.f32 %v1040_v6, %v652_v16 }
0x101d   :  { %v661_v49 = vsel %vm660_vm13, %v654_v48, %v579_v29  ;;  %v820_v29 = vsel %vm819_vm1, 1, %v1085_v7 }
0x101e   :  { %v665_v50 = vpack.c.bf16 %v661_v49, %v661_v49 }
0x1020   :  { %667 = vrot.lane.b32.xlu0 %v665_v50, %s1087_s4 }
0x1092   :  { %v668_v51 = vpop.permute.xlu0 %667 }
0x1093   :  { %968 = vmatmul.mubr.msk.bf16.vlgmr.msra.gmra.mrb[16].mxu0 %vm78_vm0, %v668_v51 }
0x1166   :  { %v706_v53 = vpop.f32.mrb[16].mxu0 }
0x1167   :  { %v712_v54 = vadd.f32 %v706_v53, %v150_v52  ;;  %v969_v55 = vpop.f32.mrb[17].mxu0 }
0x1168   :  { %v709_v56 = vpop.f32.mrb[18].mxu0 }
0x1169   :  { %1043 = vtanh.f32 %v712_v54  ;;  %v970_v57 = vpop.f32.mrb[19].mxu0  ;;  %v870_v60 = vmul.f32 -1.442695, %v712_v54 }
0x116b   :  { %1045 = vpow2.f32 %v870_v60 }
0x1173   :  { %v1044_v58 = vpop.eup %1043 }
0x1174   :  { %722 = vrot.lane.b32.xlu1 %v1044_v58, %s1086_s0 }
0x1175   :  { %v1046_v61 = vpop.eup %1045 }
0x1176   :  { %v716_v62 = vadd.f32 1.0, %v1046_v61 }
0x1178   :  { %740 = vperm.xlu1 %985, %v738_v59   ;;  %1047 = vrcp.f32 %v716_v62 }
0x1182   :  { %v1048_v0 = vpop.eup %1047 }
0x1183   :  { %v720_v13 = vmul.f32 %v1048_v0, %v662_v12 }
0x11e6   :  { %v723_v63 = vpop.permute.xlu1 %722 }
0x11e7   :  { %v725_v9 = vmul.f32 %v1048_v0, %v723_v63 }
0x11e9   :  { %727 = vrot.lane.b32.xlu0 %v725_v9, %s1087_s4 }
0x11f7   :  { %v741_v18 = vpop.permute.xlu1 %740 }
0x11f8   :  { %vm742_vm15 = vcmp.eq.s32.totalorder %v741_v18, 1 }
0x125b   :  { %v728_v14 = vpop.permute.xlu0 %727 }
0x125c   :  { %v730_v15 = vadd.f32 %v728_v14, %v720_v13 }
0x125e   :  { %1049 = vtanh.f32 %v730_v15  ;;  %v744_v34 = vsel %vm742_vm15, %v730_v15, %v662_v12 }
0x1268   :  { %v1050_v17 = vpop.eup %1049 }
0x1269   :  { %733 = vrot.lane.b32.xlu0 %v1050_v17, %s1086_s0 }
0x12db   :  { %v734_v19 = vpop.permute.xlu0 %733 }
0x12dc   :  { %v736_v3 = vmul.f32 %v1048_v0, %v734_v19 }
0x12de   :  { %v743_v20 = vsel %vm742_vm15, %v736_v3, %v661_v49 }
0x12df   :  { %v747_v21 = vpack.c.bf16 %v743_v20, %v743_v20 }
0x12e1   :  { %749 = vrot.lane.b32.xlu1 %v747_v21, %s1087_s4 }
0x1353   :  { %v750_v22 = vpop.permute.xlu1 %749 }
0x1354   :  { %976 = vmatmul.mubr.msk.bf16.vlgmr.msra.gmra.mrb[16].mxu1 %vm78_vm0, %v750_v22 }
0x1427   :  { %v788_v11 = vpop.f32.mrb[16].mxu1 }
0x1428   :  { %v794_v24 = vadd.f32 %v788_v11, %v153_v23  ;;  %v977_v25 = vpop.f32.mrb[17].mxu1 }
0x1429   :  { %v791_v26 = vpop.f32.mrb[18].mxu1 }
0x142a   :  { %1051 = vtanh.f32 %v794_v24  ;;  %v978_v27 = vpop.f32.mrb[19].mxu1  ;;  %v872_v30 = vmul.f32 -1.442695, %v794_v24 }
0x142c   :  { %1053 = vpow2.f32 %v872_v30 }
0x1434   :  { %v1052_v28 = vpop.eup %1051 }
0x1435   :  { %804 = vrot.lane.b32.xlu0 %v1052_v28, %s1086_s0 }
0x1436   :  { %v1054_v31 = vpop.eup %1053 }
0x1437   :  { %v798_v32 = vadd.f32 1.0, %v1054_v31 }
0x1439   :  { %822 = vperm.xlu0 %986, %v820_v29   ;;  %1055 = vrcp.f32 %v798_v32 }
0x1443   :  { %v1056_v10 = vpop.eup %1055 }
0x1444   :  { %v802_v35 = vmul.f32 %v1056_v10, %v744_v34 }
0x14a7   :  { %v805_v5 = vpop.permute.xlu0 %804 }
0x14a8   :  { %v807_v33 = vmul.f32 %v1056_v10, %v805_v5 }
0x14aa   :  { %809 = vrot.lane.b32.xlu1 %v807_v33, %s1087_s4 }
0x14b8   :  { %v823_v7 = vpop.permute.xlu0 %822 }
0x14b9   :  { %vm824_vm2 = vcmp.eq.s32.totalorder %v823_v7, 1 }
0x151c   :  { %v810_v8 = vpop.permute.xlu1 %809 }
0x151d   :  { %v812_v36 = vadd.f32 %v810_v8, %v802_v35 }
0x151f   :  { %1057 = vtanh.f32 %v812_v36 }
0x1529   :  { %v1058_v37 = vpop.eup %1057 }
0x152a   :  { %815 = vrot.lane.b32.xlu1 %v1058_v37, %s1086_s0 }
0x159c   :  { %v816_v38 = vpop.permute.xlu1 %815 }
0x159d   :  { %v818_v2 = vmul.f32 %v1056_v10, %v816_v38 }
0x159f   :  { %v825_v1 = vsel %vm824_vm2, %v818_v2, %v743_v20 }
0x15a0   :  { %827 = vrot.lane.b32.xlu0 %v825_v1, %s1087_s4 }
0x1612   :  { %v828_v4 = vpop.permute.xlu0 %827 }
0x1613   :  { %830 = vst.msk [vmem:[#allocation3] sm:$0xff] %vm78_vm0, %v828_v4 }
0x1614   :  { %1070 = shalt.err (!%p1067_p4)
}
0x1615   :  { %s1071_s15 = scalar_lea.hbm %s1325_s5, 128 }
0x1616   :  { %p1072_p5 = scmp.ne.s32.totalorder %s1325_s5, %s1071_s15  ;;  %p1075_p6 = scmp.lt.u32.totalorder %s1071_s15, %s1325_s5 }
0x1618   :  { %p1077_p7 = pnand %p1075_p6, %p1072_p5 }
0x161a   :  { %1080 = shalt.err (!%p1077_p7)
}
0x161b   :  { %840 = dma.vmem_to_hbm [thread:$0]  %s838_s11, 128, %s1325_s5, [#allocation4]  }
0x161c   :  { %1081 = dma.done.wait [#allocation4], 128  }
0x161d   :  { %1082 = vsyncadd [#allocation4], 4294967168 }
0x161e   :  { %844 = vsyncpa [#allocation4], 1 }

</bundles_post_ra>
